<compile_context>
chip_gen: v5e
topology: v5e:2x2
jax: 0.10.0
libtpu: 0.0.40
codegen_flags: <defaults>
</compile_context>

<pallas_src>
import functools
import math

import jax
import jax.numpy as jnp
from jax.experimental import pallas as pl
from jax.experimental.pallas import tpu as pltpu

_LANES = 128


# --------------------------------------------------------------------------
# Kernels.  Blocks: data (N, ts, 128); coeffs (N, 1, 1); out (N, 128).
# acc_ref is a per-core VMEM scratch (N, ts, 128) f32.
# --------------------------------------------------------------------------
def _pair_loss_kernel(f_ref, tgt_ref, out_ref, acc_ref):
    """target is a plain tensor (X0 / EPS targets)."""
    k = pl.program_id(1)

    @pl.when(k == 0)
    def _():
        acc_ref[...] = jnp.zeros_like(acc_ref)

    r = f_ref[...].astype(jnp.float32) - tgt_ref[...].astype(jnp.float32)
    acc_ref[...] += r * r

    @pl.when(k == pl.num_programs(1) - 1)
    def _():
        # One cross-sublane reduce + one lane-dense (N,128) store per group.
        out_ref[...] = jnp.sum(acc_ref[...], axis=1)


def _v_loss_kernel(ca_ref, cs_ref, f_ref, x0_ref, eps_ref, out_ref, acc_ref):
    """target = alpha'(t)*x_0 + sigma'(t)*eps (V prediction)."""
    k = pl.program_id(1)

    @pl.when(k == 0)
    def _():
        acc_ref[...] = jnp.zeros_like(acc_ref)

    target = (ca_ref[...] * x0_ref[...].astype(jnp.float32)
              + cs_ref[...] * eps_ref[...].astype(jnp.float32))
    r = f_ref[...].astype(jnp.float32) - target
    acc_ref[...] += r * r

    @pl.when(k == pl.num_programs(1) - 1)
    def _():
        out_ref[...] = jnp.sum(acc_ref[...], axis=1)


# --------------------------------------------------------------------------
# Tiling helpers.
# --------------------------------------------------------------------------
def _vmem_capacity_bytes():
    try:
        return int(pltpu.get_tpu_info().vmem_capacity_bytes)
    except Exception:
        return 64 * 1024 * 1024  # conservative default (v7x per-core VMEM)


def _choose_block_rows(n_rows, n, itemsize, n_data, buffers, budget_bytes):
    """Largest (8,128)-legal row tile whose pipelined footprint fits the budget."""
    row_in = n * _LANES * itemsize                            # one row, one input
    row_tot = n_data * buffers * row_in + n * _LANES * 4      # inputs + f32 scratch
    max_rows = max(8, budget_bytes // row_tot)
    if n_rows <= max_rows:
        return n_rows             # one chunk covers the whole reduce dim (full-dim block)
    return max(8, (max_rows // 8) * 8)


def _data_block_spec(block_shape, index_map, buffers):
    if buffers and buffers > 2:
        try:  # optional deeper input pipelining (hides residual exposed DMA latency)
            return pl.BlockSpec(block_shape, index_map,
                                pipeline_mode=pl.Buffered(int(buffers)))
        except Exception:
            pass
    return pl.BlockSpec(block_shape, index_map)


# --------------------------------------------------------------------------
# Public wrapper (forward pass of SamplewiseDiffusionLoss).
# --------------------------------------------------------------------------
def samplewise_diffusion_loss(x_t, f_x_t, x_0, eps, t, *, target_type="V",
                              alpha_prime=None, sigma_prime=None,
                              block_rows=None, input_buffers=2,
                              vmem_budget_bytes=None):
    """Per-sample sum of squared residuals; returns (N,) float32."""
    del x_t  # unused by all supported target types (matches the PyTorch module)
    N = f_x_t.shape[0]
    D = math.prod(f_x_t.shape[1:])
    itemsize = jnp.dtype(f_x_t.dtype).itemsize

    if target_type == "X0":
        data, coeffs, kernel = [f_x_t, x_0], [], _pair_loss_kernel
    elif target_type == "EPS":
        data, coeffs, kernel = [f_x_t, eps], [], _pair_loss_kernel
    elif target_type == "V":
        if alpha_prime is None or sigma_prime is None:
            raise ValueError("target_type='V' needs alpha_prime and sigma_prime.")
        tf = t.astype(jnp.float32)
        c_a = jnp.asarray(alpha_prime(tf), jnp.float32).reshape(N, 1, 1)
        c_s = jnp.asarray(sigma_prime(tf), jnp.float32).reshape(N, 1, 1)
        data, coeffs, kernel = [f_x_t, x_0, eps], [c_a, c_s], _v_loss_kernel
    else:
        # TODO(synk): SCORE target raises in PyTorch too (no known target function).
        raise ValueError("SCORE target is not supported (matches PyTorch module).")
    n_data = len(data)

    # ---- tiling -----------------------------------------------------------
    cap = _vmem_capacity_bytes()
    if vmem_budget_bytes is None:
        vmem_budget_bytes = (cap * 3) // 5            # ~60% of VMEM for the pipeline
    R = pl.cdiv(D, _LANES)                            # feature rows of 128 lanes
    ts = block_rows if block_rows is not None else _choose_block_rows(
        R, N, itemsize, n_data, input_buffers, vmem_budget_bytes)
    n_chunks = pl.cdiv(R, ts)
    # Split the reduction into 2 groups ("parallel" axis -> v7x's 2 TCs) when it
    # divides evenly; each group accumulates into / writes its own output block.
    G = 2 if (n_chunks >= 2 and n_chunks % 2 == 0) else 1
    num_k = n_chunks // G
    Rp = n_chunks * ts
    Dp = Rp * _LANES

    def _prep(a):
        a = a.reshape(N, D)
        if Dp != D:
            # Fallback only for ragged feature dims (D not a multiple of 128*ts):
            # zero padding contributes exactly 0 to the loss.
            a = jnp.pad(a, ((0, 0), (0, Dp - D)))
        return a.reshape(N, Rp, _LANES)

    data = [_prep(a) for a in data]

    data_spec = _data_block_spec((N, ts, _LANES),
                                 lambda g, k: (0, g * num_k + k, 0),
                                 input_buffers)
    coef_spec = pl.BlockSpec((N, 1, 1), lambda g, k: (0, 0, 0))
    in_specs = [coef_spec] * len(coeffs) + [data_spec] * n_data

    tile_in = N * ts * _LANES * itemsize
    est = n_data * max(2, input_buffers) * tile_in + N * ts * _LANES * 4 + (1 << 20)
    vmem_limit = max(32 << 20, min(cap - (8 << 20), int(est * 1.3)))

    out = pl.pallas_call(
        kernel,
        out_shape=jax.ShapeDtypeStruct((N, G * _LANES), jnp.float32),
        grid_spec=pltpu.PrefetchScalarGridSpec(
            num_scalar_prefetch=0,
            grid=(G, num_k),
            in_specs=in_specs,
            out_specs=pl.BlockSpec((N, _LANES), lambda g, k: (0, g)),
            scratch_shapes=[pltpu.VMEM((N, ts, _LANES), jnp.float32)],
        ),
        compiler_params=pltpu.CompilerParams(
            dimension_semantics=("parallel", "arbitrary"),
            vmem_limit_bytes=int(vmem_limit),
        ),
    )(*coeffs, *data)

    # Tiny final reduce over the per-lane / per-group partial sums.
    return jnp.sum(out, axis=1)


# --------------------------------------------------------------------------
# Demo / self-test: cosine schedule  alpha(t)=cos(pi/2 t), sigma(t)=sin(pi/2 t)
# --------------------------------------------------------------------------
def _alpha_prime(t):
    return -(jnp.pi / 2.0) * jnp.sin(jnp.pi / 2.0 * t)


def _sigma_prime(t):
    return (jnp.pi / 2.0) * jnp.cos(jnp.pi / 2.0 * t)


def _ref_loss(f_x_t, x_0, eps, t, target_type):
    if target_type == "X0":
        tgt = x_0
    elif target_type == "EPS":
        tgt = eps
    else:
        b = (1,) * (x_0.ndim - 1)
        tgt = (_alpha_prime(t).reshape(-1, *b) * x_0
               + _sigma_prime(t).reshape(-1, *b) * eps)
    r = f_x_t.astype(jnp.float32) - tgt.astype(jnp.float32)
    return jnp.sum((r * r).reshape(f_x_t.shape[0], -1), axis=1)


if __name__ == "__main__":
    key = jax.random.PRNGKey(0)
    loss_v = functools.partial(samplewise_diffusion_loss, target_type="V",
                               alpha_prime=_alpha_prime, sigma_prime=_sigma_prime)

    def make_inputs(shape, k):
        k1, k2, k3, k4 = jax.random.split(k, 4)
        x_0 = jax.random.normal(k1, shape, jnp.float32)
        eps = jax.random.normal(k2, shape, jnp.float32)
        f_x_t = jax.random.normal(k3, shape, jnp.float32)
        t = jax.random.uniform(k4, (shape[0],), jnp.float32)
        b = (1,) * (len(shape) - 1)
        x_t = (jnp.cos(jnp.pi / 2.0 * t).reshape(-1, *b) * x_0
               + jnp.sin(jnp.pi / 2.0 * t).reshape(-1, *b) * eps)
        return x_t, f_x_t, x_0, eps, t

    # 1) Base case: N=2, C=4, 16x16 (D=1024 -> one (2, 8, 128) tile), all targets.
    ins = make_inputs((2, 4, 16, 16), jax.random.fold_in(key, 0))
    out = jax.block_until_ready(loss_v(*ins))
    ref = _ref_loss(ins[1], ins[2], ins[3], ins[4], "V")
    assert jnp.allclose(out, ref, rtol=1e-4, atol=1e-3), (out, ref)

    for tt in ("X0", "EPS"):
        o = jax.block_until_ready(samplewise_diffusion_loss(*ins, target_type=tt))
        r = _ref_loss(ins[1], ins[2], ins[3], ins[4], tt)
        assert jnp.allclose(o, r, rtol=1e-4, atol=1e-3), (tt, o, r)

    # 2) Multi-chunk + 2-group ("parallel") path: D=8192, forced 8-row tiles
    #    -> grid (2, 4); each group owns its own lane-dense (N,128) output block.
    ins2 = make_inputs((2, 8, 32, 32), jax.random.fold_in(key, 1))
    out2 = jax.block_until_ready(loss_v(*ins2, block_rows=8))
    ref2 = _ref_loss(ins2[1], ins2[2], ins2[3], ins2[4], "V")
    assert jnp.allclose(out2, ref2, rtol=1e-4, atol=1e-2), (out2, ref2)

    # 3) Ragged feature dim (D=300, not a multiple of 128): exercises the
    #    zero-pad fallback path.
    ins3 = make_inputs((2, 3, 10, 10), jax.random.fold_in(key, 2))
    out3 = jax.block_until_ready(loss_v(*ins3))
    ref3 = _ref_loss(ins3[1], ins3[2], ins3[3], ins3[4], "V")
    assert jnp.allclose(out3, ref3, rtol=1e-4, atol=1e-3), (out3, ref3)

    print("KERNEL_OK")
</pallas_src>

<mosaic_0001>
module attributes {stable_mosaic.version = 11 : i64} {
  func.func @_v_loss_kernel(%arg0: i32, %arg1: i32, %arg2: memref<2x1x1xf32, #tpu.memory_space<vmem>>, %arg3: memref<2x1x1xf32, #tpu.memory_space<vmem>>, %arg4: memref<2x8x128xf32, #tpu.memory_space<vmem>>, %arg5: memref<2x8x128xf32, #tpu.memory_space<vmem>>, %arg6: memref<2x8x128xf32, #tpu.memory_space<vmem>>, %arg7: memref<2x128xf32, #tpu.memory_space<vmem>>, %arg8: memref<2x8x128xf32, #tpu.memory_space<vmem>>) attributes {dimension_semantics = [#tpu.dimension_semantics<parallel>, #tpu.dimension_semantics<arbitrary>], iteration_bounds = array<i64: 1, 1>, scalar_prefetch = 0 : i64, scratch_operands = 1 : i64, tpu.core_type = #tpu.core_type<tc>, window_params = [{pipeline_mode = #tpu.pipeline_mode<synchronous>, transform_indices = @transform_0, window_bounds = array<i64: 2, 1, 1>}, {pipeline_mode = #tpu.pipeline_mode<synchronous>, transform_indices = @transform_1, window_bounds = array<i64: 2, 1, 1>}, {transform_indices = @transform_2, window_bounds = array<i64: 2, 8, 128>}, {transform_indices = @transform_3, window_bounds = array<i64: 2, 8, 128>}, {transform_indices = @transform_4, window_bounds = array<i64: 2, 8, 128>}, {transform_indices = @transform_5, window_bounds = array<i64: 2, 128>}]} {
    %c0_i32 = arith.constant 0 : i32
    %0 = arith.cmpi eq, %arg1, %c0_i32 : i32
    %1 = arith.extui %0 : i1 to i32
    %c0_i32_0 = arith.constant 0 : i32
    %2 = arith.cmpi ne, %1, %c0_i32_0 : i32
    scf.if %2 {
      %cst = arith.constant 0.000000e+00 : f32
      %21 = vector.broadcast %cst : f32 to vector<2x8x128xf32>
      %c0_23 = arith.constant 0 : index
      %c0_24 = arith.constant 0 : index
      %c0_25 = arith.constant 0 : index
      %22 = vector.load %arg8[%c0_23, %c0_24, %c0_25] : memref<2x8x128xf32, #tpu.memory_space<vmem>>, vector<2x8x128xf32>
      tpu.vector_store %arg8[%c0_23, %c0_24, %c0_25], %21 {strides = array<i32>} : memref<2x8x128xf32, #tpu.memory_space<vmem>>, vector<2x8x128xf32>,
    } else {
    }
    %c0 = arith.constant 0 : index
    %c0_1 = arith.constant 0 : index
    %c0_2 = arith.constant 0 : index
    %3 = vector.load %arg2[%c0, %c0_1, %c0_2] : memref<2x1x1xf32, #tpu.memory_space<vmem>>, vector<2x1x1xf32>
    %c0_3 = arith.constant 0 : index
    %c0_4 = arith.constant 0 : index
    %c0_5 = arith.constant 0 : index
    %4 = vector.load %arg5[%c0_3, %c0_4, %c0_5] : memref<2x8x128xf32, #tpu.memory_space<vmem>>, vector<2x8x128xf32>
    %5 = vector.broadcast %3 : vector<2x1x1xf32> to vector<2x8x128xf32>
    %6 = arith.mulf %5, %4 : vector<2x8x128xf32>
    %c0_6 = arith.constant 0 : index
    %c0_7 = arith.constant 0 : index
    %c0_8 = arith.constant 0 : index
    %7 = vector.load %arg3[%c0_6, %c0_7, %c0_8] : memref<2x1x1xf32, #tpu.memory_space<vmem>>, vector<2x1x1xf32>
    %c0_9 = arith.constant 0 : index
    %c0_10 = arith.constant 0 : index
    %c0_11 = arith.constant 0 : index
    %8 = vector.load %arg6[%c0_9, %c0_10, %c0_11] : memref<2x8x128xf32, #tpu.memory_space<vmem>>, vector<2x8x128xf32>
    %9 = vector.broadcast %7 : vector<2x1x1xf32> to vector<2x8x128xf32>
    %10 = arith.mulf %9, %8 : vector<2x8x128xf32>
    %11 = arith.addf %6, %10 : vector<2x8x128xf32>
    %c0_12 = arith.constant 0 : index
    %c0_13 = arith.constant 0 : index
    %c0_14 = arith.constant 0 : index
    %12 = vector.load %arg4[%c0_12, %c0_13, %c0_14] : memref<2x8x128xf32, #tpu.memory_space<vmem>>, vector<2x8x128xf32>
    %13 = arith.subf %12, %11 : vector<2x8x128xf32>
    %c0_15 = arith.constant 0 : index
    %c0_16 = arith.constant 0 : index
    %c0_17 = arith.constant 0 : index
    %14 = vector.load %arg8[%c0_15, %c0_16, %c0_17] : memref<2x8x128xf32, #tpu.memory_space<vmem>>, vector<2x8x128xf32>
    %15 = arith.mulf %13, %13 : vector<2x8x128xf32>
    %16 = arith.addf %14, %15 : vector<2x8x128xf32>
    %c0_18 = arith.constant 0 : index
    %c0_19 = arith.constant 0 : index
    %c0_20 = arith.constant 0 : index
    %17 = vector.load %arg8[%c0_18, %c0_19, %c0_20] : memref<2x8x128xf32, #tpu.memory_space<vmem>>, vector<2x8x128xf32>
    tpu.vector_store %arg8[%c0_18, %c0_19, %c0_20], %16 {strides = array<i32>} : memref<2x8x128xf32, #tpu.memory_space<vmem>>, vector<2x8x128xf32>,
    %c0_i32_21 = arith.constant 0 : i32
    %18 = arith.cmpi eq, %arg1, %c0_i32_21 : i32
    %19 = arith.extui %18 : i1 to i32
    %c0_i32_22 = arith.constant 0 : i32
    %20 = arith.cmpi ne, %19, %c0_i32_22 : i32
    scf.if %20 {
      %c0_23 = arith.constant 0 : index
      %c0_24 = arith.constant 0 : index
      %c0_25 = arith.constant 0 : index
      %21 = vector.load %arg8[%c0_23, %c0_24, %c0_25] : memref<2x8x128xf32, #tpu.memory_space<vmem>>, vector<2x8x128xf32>
      %cst = arith.constant dense<0.000000e+00> : vector<2x128xf32>
      %22 = vector.multi_reduction <add>, %21, %cst [1] : vector<2x8x128xf32> to vector<2x128xf32>
      %c0_26 = arith.constant 0 : index
      %c0_27 = arith.constant 0 : index
      %23 = vector.load %arg7[%c0_26, %c0_27] : memref<2x128xf32, #tpu.memory_space<vmem>>, vector<2x128xf32>
      tpu.vector_store %arg7[%c0_26, %c0_27], %22 {strides = array<i32>} : memref<2x128xf32, #tpu.memory_space<vmem>>, vector<2x128xf32>,
    } else {
    }
    return
  }
  func.func @transform_0(%arg0: i32, %arg1: i32) -> (i32, i32, i32) {
    %c0_i32 = arith.constant 0 : i32
    %c0_i32_0 = arith.constant 0 : i32
    %c0_i32_1 = arith.constant 0 : i32
    %c0_i32_2 = arith.constant 0 : i32
    return %c0_i32, %c0_i32_0, %c0_i32_1 : i32, i32, i32
  }
  func.func @transform_1(%arg0: i32, %arg1: i32) -> (i32, i32, i32) {
    %c0_i32 = arith.constant 0 : i32
    %c0_i32_0 = arith.constant 0 : i32
    %c0_i32_1 = arith.constant 0 : i32
    %c0_i32_2 = arith.constant 0 : i32
    return %c0_i32, %c0_i32_0, %c0_i32_1 : i32, i32, i32
  }
  func.func @transform_2(%arg0: i32, %arg1: i32) -> (i32, i32, i32) {
    %c1_i32 = arith.constant 1 : i32
    %0 = arith.muli %arg0, %c1_i32 : i32
    %1 = arith.addi %0, %arg1 : i32
    %c0_i32 = arith.constant 0 : i32
    %c0_i32_0 = arith.constant 0 : i32
    %c0_i32_1 = arith.constant 0 : i32
    return %c0_i32, %1, %c0_i32_0 : i32, i32, i32
  }
  func.func @transform_3(%arg0: i32, %arg1: i32) -> (i32, i32, i32) {
    %c1_i32 = arith.constant 1 : i32
    %0 = arith.muli %arg0, %c1_i32 : i32
    %1 = arith.addi %0, %arg1 : i32
    %c0_i32 = arith.constant 0 : i32
    %c0_i32_0 = arith.constant 0 : i32
    %c0_i32_1 = arith.constant 0 : i32
    return %c0_i32, %1, %c0_i32_0 : i32, i32, i32
  }
  func.func @transform_4(%arg0: i32, %arg1: i32) -> (i32, i32, i32) {
    %c1_i32 = arith.constant 1 : i32
    %0 = arith.muli %arg0, %c1_i32 : i32
    %1 = arith.addi %0, %arg1 : i32
    %c0_i32 = arith.constant 0 : i32
    %c0_i32_0 = arith.constant 0 : i32
    %c0_i32_1 = arith.constant 0 : i32
    return %c0_i32, %1, %c0_i32_0 : i32, i32, i32
  }
  func.func @transform_5(%arg0: i32, %arg1: i32) -> (i32, i32) {
    %c0_i32 = arith.constant 0 : i32
    %c0_i32_0 = arith.constant 0 : i32
    return %c0_i32, %arg0 : i32, i32
  }
}

</mosaic_0001>

<bundles_post_ra>
// kernel: tpu_custom_call.1
= control target key start
LH: loop header
LB: loop body
LE: loop exit
PB: predicated region body
PF: predicated region fallthrough
CT: control target
= control target key end

     0   :  { %10 = vsyncpa [#allocation4], 0  ;;  %s353_s0 = inlined_call_operand.vmem [shape: f32[2,1,1], index: 0, kind: input, shape index: {}]   ;;  %s354_s1 = inlined_call_operand.vmem [shape: f32[2,1,1], index: 1, kind: input, shape index: {}]   ;;  %s355_s2 = inlined_call_operand.hbm [shape: f32[2,8,128], index: 2, kind: input, shape index: {}]   ;;  %s356_s3 = inlined_call_operand.hbm [shape: f32[2,8,128], index: 3, kind: input, shape index: {}]   ;;  %s357_s4 = inlined_call_operand.hbm [shape: f32[2,8,128], index: 4, kind: input, shape index: {}]   ;;  %s358_s5 = inlined_call_operand.hbm [shape: f32[2,128], index: 5, kind: output, shape index: {}]  }
   0x1   :  { %11 = vsyncpa [#allocation7], 0 }
   0x2   :  { %12 = vsyncpa [#allocation5], 0  ;;  %s40_s20 = sshll.u32 %s356_s3, 4  ;;  %s292_s21 = smov [#allocation6]   ;;  %s41_s20 = int_to_ptr.hbm [resolvable:$true] %s40_s20 }
   0x3   :  { %s42_s22 = sshll.u32 %s292_s21, 4  ;;  %s24_s25 = sshll.u32 %s355_s2, 4  ;;  %s43_s22 = int_to_ptr.vmem [resolvable:$true] %s42_s22  ;;  %s25_s25 = int_to_ptr.hbm [resolvable:$true] %s24_s25 }
   0x4   :  { %s293_s26 = smov 128   ;;  %s294_s27 = smov 8  }
   0x5   :  { %48 = dma.hbm_to_vmem [thread:$0]  %s41_s20, 256, %s43_s22, [#allocation7], %s293_s26, %s293_s26, %s294_s27  }
   0x6   :  { %s295_s28 = smov [#allocation3]   ;;  %s56_s7 = sshll.u32 %s357_s4, 4  ;;  %s57_s7 = int_to_ptr.hbm [resolvable:$true] %s56_s7 }
   0x7   :  { %s26_s29 = sshll.u32 %s295_s28, 4  ;;  %s296_s3 = smov [#allocation8]   ;;  %s27_s29 = int_to_ptr.vmem [resolvable:$true] %s26_s29 }
   0x8   :  { %32 = dma.hbm_to_vmem [thread:$0]  %s25_s25, 256, %s27_s29, [#allocation4], %s293_s26, %s293_s26, %s294_s27  }
   0x9   :  { %s58_s8 = sshll.u32 %s296_s3, 4  ;;  %s59_s8 = int_to_ptr.vmem [resolvable:$true] %s58_s8 }
   0xa   :  { %64 = dma.hbm_to_vmem [thread:$0]  %s57_s7, 256, %s59_s8, [#allocation7], %s293_s26, %s293_s26, %s294_s27  }
   0xb   :  { %286 = dma.done.wait [#allocation4], 256  }
   0xc   :  { %287 = vsyncadd [#allocation4], 4294967040 }
   0xd   :  { %288 = dma.done.wait [#allocation7], 512  }
   0xe   :  { %289 = vsyncadd [#allocation7], 4294966784  ;;  %v297_v0 = vmov 0   ;;  %v186_v1 = vld [vmem:[%s354_s1] ss:$0 sm:$0xff]  ;;  %v88_v6 = vld [vmem:[#allocation6] sm:$0xff] }
   0xf   :  { %185 = vset.pattern.permute.xlu1 %v297_v0  ;;  %184 = vset.pattern.permute.xlu0 %v297_v0  ;;  %v187_v2 = vld [vmem:[%s353_s0] ss:$0 sm:$0xff]  ;;  %v188_v3 = vld [vmem:[%s354_s1 + $0x1] ss:$0 sm:$0xff]  ;;  %v107_v14 = vld [vmem:[#allocation8 + $0x8] sm:$0xff]  ;;  %s166_s17 = sshll.u32 %s358_s5, 4  ;;  %s167_s17 = int_to_ptr.hbm [resolvable:$true] %s166_s17 }
  0x10   :  { %113 = vperm.xlu1 %185, %v186_v1   ;;  %95 = vperm.xlu0 %184, %v187_v2   ;;  %v189_v4 = vld [vmem:[%s353_s0 + $0x1] ss:$0 sm:$0xff]  ;;  %v89_v15 = vld [vmem:[#allocation6 + $0x8] sm:$0xff]  ;;  %v125_v22 = vld [vmem:[#allocation3 + $0x8] sm:$0xff]  ;;  %s298_s0 = smov [#allocation9]   ;;  %vm155_vm0 = vcmask 1041409  }
  0x11   :  { %v106_v5 = vld [vmem:[#allocation8] sm:$0xff]  ;;  %s164_s1 = sshll.u32 %s298_s0, 4  ;;  %s165_s1 = int_to_ptr.vmem [resolvable:$true] %s164_s1 }
  0x12   :  { %v124_v11 = vld [vmem:[#allocation3] sm:$0xff] }
  0x18   :  { %117 = vperm.xlu1 %185, %v188_v3   ;;  %99 = vperm.xlu0 %184, %v189_v4  }
  0x82   :  { %v114_v7 = vpop.permute.xlu1 %113  ;;  %v96_v9 = vpop.permute.xlu0 %95 }
  0x83   :  { %v120_v8 = vmul.f32 %v114_v7, %v106_v5  ;;  %v102_v10 = vmul.f32 %v96_v9, %v88_v6 }
  0x85   :  { %v122_v12 = vadd.f32 %v120_v8, %v102_v10 }
  0x87   :  { %v126_v13 = vsub.f32 %v124_v11, %v122_v12 }
  0x89   :  { %v130_v16 = vmul.f32 %v126_v13, %v126_v13 }
  0x8a   :  { %v118_v17 = vpop.permute.xlu1 %117  ;;  %v100_v19 = vpop.permute.xlu0 %99 }
  0x8b   :  { %v121_v18 = vmul.f32 %v118_v17, %v107_v14  ;;  %v141_v20 = vrot.slane %v130_v16, 4  ;;  %v103_v21 = vmul.f32 %v100_v19, %v89_v15 }
  0x8d   :  { %v142_v23 = vadd.f32 %v141_v20, %v130_v16  ;;  %v123_v24 = vadd.f32 %v121_v18, %v103_v21 }
  0x8f   :  { %v127_v25 = vsub.f32 %v125_v22, %v123_v24  ;;  %v143_v26 = vrot.slane %v142_v23, 2 }
  0x91   :  { %v131_v27 = vmul.f32 %v127_v25, %v127_v25  ;;  %v144_v29 = vadd.f32 %v143_v26, %v142_v23 }
  0x93   :  { %v147_v28 = vrot.slane %v131_v27, 4  ;;  %v145_v33 = vrot.slane %v144_v29, 1 }
  0x95   :  { %v148_v30 = vadd.f32 %v147_v28, %v131_v27  ;;  %v146_v35 = vadd.f32 %v145_v33, %v144_v29 }
  0x97   :  { %v149_v31 = vrot.slane %v148_v30, 2 }
  0x99   :  { %v150_v32 = vadd.f32 %v149_v31, %v148_v30 }
  0x9b   :  { %v151_v34 = vrot.slane %v150_v32, 1 }
  0x9d   :  { %v152_v36 = vadd.f32 %v151_v34, %v150_v32 }
  0x9f   :  { %v156_v37 = vsel %vm155_vm0, %v152_v36, %v146_v35 }
  0xa0   :  { %158 = vst [vmem:[#allocation9] sm:$0x3] %v156_v37 }
  0xa1   :  { %169 = dma.vmem_to_hbm [thread:$0]  %s165_s1, 32, %s167_s17, [#allocation5]  }
  0xa2   :  { %290 = dma.done.wait [#allocation5], 32  }
  0xa3   :  { %291 = vsyncadd [#allocation5], 4294967264 }
  0xa4   :  { %174 = vsyncpa [#allocation4], 1 }
  0xa5   :  { %175 = vsyncpa [#allocation7], 1 }
  0xa6   :  { %176 = vsyncpa [#allocation5], 1 }

</bundles_post_ra>
